<compile_context>
chip_gen: v6e
topology: v6e:2x2x1
jax: 0.10.0
libtpu: 0.0.40
codegen_flags: <defaults>
</compile_context>

<pallas_src>
import functools

import jax
import jax.numpy as jnp
from jax.experimental import pallas as pl
from jax.experimental.pallas import tpu as pltpu


def _leaky_relu(x, slope=0.1):
    return jnp.where(x >= 0, x, slope * x)


def _round_up(n, m):
    return ((n + m - 1) // m) * m


# ----------------------------------------------------------------------------
# Kernel
# ----------------------------------------------------------------------------
def vae_kernel(
    x_ref,
    we1_ref, be1_ref,
    we2_ref, be2_ref,
    wheads_ref, bheads_ref,     # fused [mu | logvar | zero-pad] head
    wd1_ref, bd1_ref,
    wd2_ref, bd2_ref,
    wd3_ref, bd3_ref,
    eps_ref,
    heads_out_ref, recon_out_ref,
    *, z_dim,
):
    mm = functools.partial(jnp.dot, preferred_element_type=jnp.float32)
    cdt = we1_ref.dtype  # matmul operand dtype (bf16); accumulation is f32

    x = x_ref[...]  # already in compute dtype (cast in the wrapper)

    # ---- encoder (2x Linear + LeakyReLU(0.1); Dropout p=0.0 is identity) ----
    h = _leaky_relu(mm(x, we1_ref[...]) + be1_ref[...])
    h = _leaky_relu(mm(h.astype(cdt), we2_ref[...]) + be2_ref[...])

    # ---- fused latent heads: one lane-dense matmul, [mu | logvar | pad] ----
    heads = mm(h.astype(cdt), wheads_ref[...]) + bheads_ref[...]
    mu = heads[:, :z_dim]
    logvar = heads[:, z_dim:2 * z_dim]

    # ---- reparameterize: z = eps * exp(0.5*logvar) + mu (f32) ----
    z = eps_ref[...] * jnp.exp(0.5 * logvar) + mu

    # ---- decoder (3x Linear + LeakyReLU, then Sigmoid) ----
    d = _leaky_relu(mm(z.astype(cdt), wd1_ref[...]) + bd1_ref[...])
    d = _leaky_relu(mm(d.astype(cdt), wd2_ref[...]) + bd2_ref[...])
    d = _leaky_relu(mm(d.astype(cdt), wd3_ref[...]) + bd3_ref[...])
    # sigmoid(d) = 1 / (1 + exp(-d)); divide goes to EUP via approx reciprocal.
    recon = pl.reciprocal(1.0 + jnp.exp(-d), approx=True)

    heads_out_ref[...] = heads.astype(heads_out_ref.dtype)
    recon_out_ref[...] = recon.astype(recon_out_ref.dtype)


# ----------------------------------------------------------------------------
# Wrapper
# ----------------------------------------------------------------------------
@functools.partial(jax.jit, static_argnames=("block_b",))
def vae_forward(x, packed_params, eps, *, block_b=256):
    """x: (B, input_shape) f32, eps: (B, z_dim) f32.  Returns (mu, logvar, recon)."""
    B, in_dim = x.shape
    z_dim = eps.shape[1]
    heads_w = packed_params["wheads"].shape[1]      # round_up(2*z_dim, 128)
    cdt = packed_params["we1"].dtype                 # bf16 compute dtype

    # Batch tile: at least 8 sublanes, at most block_b; pad batch to a multiple.
    tb = min(block_b, _round_up(B, 8))
    bp = _round_up(B, tb)

    xp = jnp.zeros((bp, in_dim), cdt).at[:B].set(x.astype(cdt))
    epsp = jnp.zeros((bp, z_dim), jnp.float32).at[:B].set(eps.astype(jnp.float32))

    batched = lambda i: (i, 0)   # x / eps / outputs: tiled over batch
    resident = lambda i: (0, 0)  # weights / biases: constant -> stay in VMEM

    def wspec(p):
        return pl.BlockSpec(p.shape, resident)

    in_specs = [
        pl.BlockSpec((tb, in_dim), batched),                  # x
        wspec(packed_params["we1"]), wspec(packed_params["be1"]),
        wspec(packed_params["we2"]), wspec(packed_params["be2"]),
        wspec(packed_params["wheads"]), wspec(packed_params["bheads"]),
        wspec(packed_params["wd1"]), wspec(packed_params["bd1"]),
        wspec(packed_params["wd2"]), wspec(packed_params["bd2"]),
        wspec(packed_params["wd3"]), wspec(packed_params["bd3"]),
        pl.BlockSpec((tb, z_dim), batched),                   # eps
    ]
    out_specs = (
        pl.BlockSpec((tb, heads_w), batched),                 # [mu | logvar | pad]
        pl.BlockSpec((tb, in_dim), batched),                  # recon
    )
    out_shapes = (
        jax.ShapeDtypeStruct((bp, heads_w), jnp.float32),
        jax.ShapeDtypeStruct((bp, in_dim), jnp.float32),
    )

    heads, recon = pl.pallas_call(
        functools.partial(vae_kernel, z_dim=z_dim),
        out_shape=out_shapes,
        grid=(bp // tb,),
        in_specs=in_specs,
        out_specs=out_specs,
        compiler_params=pltpu.CompilerParams(
            dimension_semantics=("parallel",)),
    )(
        xp,
        packed_params["we1"], packed_params["be1"],
        packed_params["we2"], packed_params["be2"],
        packed_params["wheads"], packed_params["bheads"],
        packed_params["wd1"], packed_params["bd1"],
        packed_params["wd2"], packed_params["bd2"],
        packed_params["wd3"], packed_params["bd3"],
        epsp,
    )

    mu = heads[:B, :z_dim]
    logvar = heads[:B, z_dim:2 * z_dim]
    return mu, logvar, recon[:B]


# ----------------------------------------------------------------------------
# Params
# ----------------------------------------------------------------------------
def init_linear(key, in_features, out_features):
    """PyTorch-default-like uniform init; weight returned as [in, out]."""
    kw, kb = jax.random.split(key)
    bound = 1.0 / jnp.sqrt(in_features)
    w = jax.random.uniform(kw, (in_features, out_features), jnp.float32, -bound, bound)
    b = jax.random.uniform(kb, (1, out_features), jnp.float32, -bound, bound)
    return w, b


def init_params(key, input_shape, n_hidden, z_dim):
    keys = jax.random.split(key, 7)
    we1, be1 = init_linear(keys[0], input_shape, n_hidden)
    we2, be2 = init_linear(keys[1], n_hidden, n_hidden)
    wmu, bmu = init_linear(keys[2], n_hidden, z_dim)
    wlv, blv = init_linear(keys[3], n_hidden, z_dim)
    wd1, bd1 = init_linear(keys[4], z_dim, n_hidden)
    wd2, bd2 = init_linear(keys[5], n_hidden, n_hidden)
    wd3, bd3 = init_linear(keys[6], n_hidden, input_shape)
    return dict(
        we1=we1, be1=be1, we2=we2, be2=be2,
        wmu=wmu, bmu=bmu, wlv=wlv, blv=blv,
        wd1=wd1, bd1=bd1, wd2=wd2, bd2=bd2, wd3=wd3, bd3=bd3,
    )


def pack_params(p, compute_dtype=jnp.bfloat16):
    """Fuse mu/logvar heads (lane-padded to 128) and cast weights to bf16.

    Biases stay f32 (elementwise adds happen on the f32 accumulator).
    """
    n_hidden, z_dim = p["wmu"].shape
    heads_w = _round_up(2 * z_dim, 128)
    wheads = jnp.zeros((n_hidden, heads_w), jnp.float32)
    wheads = wheads.at[:, :z_dim].set(p["wmu"]).at[:, z_dim:2 * z_dim].set(p["wlv"])
    bheads = jnp.zeros((1, heads_w), jnp.float32)
    bheads = bheads.at[:, :z_dim].set(p["bmu"]).at[:, z_dim:2 * z_dim].set(p["blv"])
    return dict(
        we1=p["we1"].astype(compute_dtype), be1=p["be1"],
        we2=p["we2"].astype(compute_dtype), be2=p["be2"],
        wheads=wheads.astype(compute_dtype), bheads=bheads,
        wd1=p["wd1"].astype(compute_dtype), bd1=p["bd1"],
        wd2=p["wd2"].astype(compute_dtype), bd2=p["bd2"],
        wd3=p["wd3"].astype(compute_dtype), bd3=p["bd3"],
    )


# ----------------------------------------------------------------------------
# References
# ----------------------------------------------------------------------------
def vae_reference_matched(x, pp, eps, z_dim):
    """Pure-JAX reference using the same bf16 packing as the kernel."""
    cdt = pp["we1"].dtype
    mm = lambda a, b: jnp.dot(a.astype(cdt), b, preferred_element_type=jnp.float32)
    h = _leaky_relu(mm(x, pp["we1"]) + pp["be1"])
    h = _leaky_relu(mm(h, pp["we2"]) + pp["be2"])
    heads = mm(h, pp["wheads"]) + pp["bheads"]
    mu = heads[:, :z_dim]
    logvar = heads[:, z_dim:2 * z_dim]
    z = eps * jnp.exp(0.5 * logvar) + mu
    d = _leaky_relu(mm(z, pp["wd1"]) + pp["bd1"])
    d = _leaky_relu(mm(d, pp["wd2"]) + pp["bd2"])
    d = _leaky_relu(mm(d, pp["wd3"]) + pp["bd3"])
    return mu, logvar, 1.0 / (1.0 + jnp.exp(-d))


def vae_reference_f32(x, p, eps):
    """Full-precision reference mirroring the PyTorch forward."""
    h = _leaky_relu(x @ p["we1"] + p["be1"])
    h = _leaky_relu(h @ p["we2"] + p["be2"])
    mu = h @ p["wmu"] + p["bmu"]
    logvar = h @ p["wlv"] + p["blv"]
    z = eps * jnp.exp(0.5 * logvar) + mu
    d = _leaky_relu(z @ p["wd1"] + p["bd1"])
    d = _leaky_relu(d @ p["wd2"] + p["bd2"])
    d = _leaky_relu(d @ p["wd3"] + p["bd3"])
    return mu, logvar, jax.nn.sigmoid(d)


# ----------------------------------------------------------------------------
# Demo / correctness check
# ----------------------------------------------------------------------------
if __name__ == "__main__":
    # Small shapes consistent with the module: flattened image input.
    B = 8
    INPUT_SHAPE = 256   # 16x16 image, flattened
    N_HIDDEN = 128
    Z_DIM = 32

    root = jax.random.PRNGKey(0)
    k_params, k_x, k_eps = jax.random.split(root, 3)

    raw_params = init_params(k_params, INPUT_SHAPE, N_HIDDEN, Z_DIM)
    packed_params = pack_params(raw_params)

    x = jax.random.uniform(k_x, (B, INPUT_SHAPE), jnp.float32)
    # eps for reparameterize (torch.randn_like) -- passed in for determinism.
    # TODO(synk): dropout>0 / in-kernel eps sampling would use pltpu.prng_*.
    eps = jax.random.normal(k_eps, (B, Z_DIM), jnp.float32)

    mu, logvar, recon = vae_forward(x, packed_params, eps, block_b=256)
    jax.block_until_ready((mu, logvar, recon))

    # Exact-match reference (same bf16 packing, f32 accumulation).
    mu_m, lv_m, rc_m = vae_reference_matched(x, packed_params, eps, Z_DIM)
    assert jnp.allclose(mu, mu_m, atol=1e-3, rtol=1e-3), "mu mismatch vs matched ref"
    assert jnp.allclose(logvar, lv_m, atol=1e-3, rtol=1e-3), "logvar mismatch vs matched ref"
    assert jnp.allclose(recon, rc_m, atol=5e-3, rtol=5e-3), "recon mismatch vs matched ref"

    # Loose check against full-f32 math (bounds bf16 quantization error).
    mu_f, lv_f, rc_f = vae_reference_f32(x, raw_params, eps)
    assert jnp.allclose(mu, mu_f, atol=5e-2, rtol=5e-2), "mu drifted vs f32 ref"
    assert jnp.allclose(logvar, lv_f, atol=5e-2, rtol=5e-2), "logvar drifted vs f32 ref"
    assert jnp.allclose(recon, rc_f, atol=5e-2, rtol=5e-2), "recon drifted vs f32 ref"

    print("KERNEL_OK")
</pallas_src>

<mosaic_0001>
module attributes {stable_mosaic.version = 11 : i64} {
  func.func @vae_kernel(%arg0: i32, %arg1: memref<8x256xbf16, #tpu.memory_space<vmem>>, %arg2: memref<256x128xbf16, #tpu.memory_space<vmem>>, %arg3: memref<1x128xf32, #tpu.memory_space<vmem>>, %arg4: memref<128x128xbf16, #tpu.memory_space<vmem>>, %arg5: memref<1x128xf32, #tpu.memory_space<vmem>>, %arg6: memref<128x128xbf16, #tpu.memory_space<vmem>>, %arg7: memref<1x128xf32, #tpu.memory_space<vmem>>, %arg8: memref<32x128xbf16, #tpu.memory_space<vmem>>, %arg9: memref<1x128xf32, #tpu.memory_space<vmem>>, %arg10: memref<128x128xbf16, #tpu.memory_space<vmem>>, %arg11: memref<1x128xf32, #tpu.memory_space<vmem>>, %arg12: memref<128x256xbf16, #tpu.memory_space<vmem>>, %arg13: memref<1x256xf32, #tpu.memory_space<vmem>>, %arg14: memref<8x32xf32, #tpu.memory_space<vmem>>, %arg15: memref<8x128xf32, #tpu.memory_space<vmem>>, %arg16: memref<8x256xf32, #tpu.memory_space<vmem>>) attributes {dimension_semantics = [#tpu.dimension_semantics<parallel>], iteration_bounds = array<i64: 1>, scalar_prefetch = 0 : i64, scratch_operands = 0 : i64, tpu.core_type = #tpu.core_type<tc>, window_params = [{transform_indices = @transform_0, window_bounds = array<i64: 8, 256>}, {pipeline_mode = #tpu.pipeline_mode<synchronous>, transform_indices = @transform_1, window_bounds = array<i64: 256, 128>}, {pipeline_mode = #tpu.pipeline_mode<synchronous>, transform_indices = @transform_2, window_bounds = array<i64: 1, 128>}, {pipeline_mode = #tpu.pipeline_mode<synchronous>, transform_indices = @transform_3, window_bounds = array<i64: 128, 128>}, {pipeline_mode = #tpu.pipeline_mode<synchronous>, transform_indices = @transform_4, window_bounds = array<i64: 1, 128>}, {pipeline_mode = #tpu.pipeline_mode<synchronous>, transform_indices = @transform_5, window_bounds = array<i64: 128, 128>}, {pipeline_mode = #tpu.pipeline_mode<synchronous>, transform_indices = @transform_6, window_bounds = array<i64: 1, 128>}, {pipeline_mode = #tpu.pipeline_mode<synchronous>, transform_indices = @transform_7, window_bounds = array<i64: 32, 128>}, {pipeline_mode = #tpu.pipeline_mode<synchronous>, transform_indices = @transform_8, window_bounds = array<i64: 1, 128>}, {pipeline_mode = #tpu.pipeline_mode<synchronous>, transform_indices = @transform_9, window_bounds = array<i64: 128, 128>}, {pipeline_mode = #tpu.pipeline_mode<synchronous>, transform_indices = @transform_10, window_bounds = array<i64: 1, 128>}, {pipeline_mode = #tpu.pipeline_mode<synchronous>, transform_indices = @transform_11, window_bounds = array<i64: 128, 256>}, {pipeline_mode = #tpu.pipeline_mode<synchronous>, transform_indices = @transform_12, window_bounds = array<i64: 1, 256>}, {transform_indices = @transform_13, window_bounds = array<i64: 8, 32>}, {transform_indices = @transform_14, window_bounds = array<i64: 8, 128>}, {transform_indices = @transform_15, window_bounds = array<i64: 8, 256>}]} {
    %c0 = arith.constant 0 : index
    %c0_0 = arith.constant 0 : index
    %0 = vector.load %arg1[%c0, %c0_0] : memref<8x256xbf16, #tpu.memory_space<vmem>>, vector<8x256xbf16>
    %c0_1 = arith.constant 0 : index
    %c0_2 = arith.constant 0 : index
    %1 = vector.load %arg2[%c0_1, %c0_2] : memref<256x128xbf16, #tpu.memory_space<vmem>>, vector<256x128xbf16>
    %cst = arith.constant dense<0.000000e+00> : vector<8x128xf32>
    %2 = tpu.matmul %0, %1, %cst {dimension_numbers = #tpu.dot_dimension_numbers<[1], [0], [0], [1], [0, 0, 1, 1], [], []>} : vector<8x256xbf16>, vector<256x128xbf16>, vector<8x128xf32> -> vector<8x128xf32>
    %c0_3 = arith.constant 0 : index
    %c0_4 = arith.constant 0 : index
    %3 = vector.load %arg3[%c0_3, %c0_4] : memref<1x128xf32, #tpu.memory_space<vmem>>, vector<1x128xf32>
    %4 = vector.broadcast %3 : vector<1x128xf32> to vector<8x128xf32>
    %5 = arith.addf %2, %4 : vector<8x128xf32>
    %cst_5 = arith.constant 0.000000e+00 : f32
    %6 = vector.broadcast %cst_5 : f32 to vector<8x128xf32>
    %7 = arith.cmpf oge, %5, %6 : vector<8x128xf32>
    %cst_6 = arith.constant 1.000000e-01 : f32
    %8 = vector.broadcast %cst_6 : f32 to vector<8x128xf32>
    %9 = arith.mulf %8, %5 : vector<8x128xf32>
    %10 = arith.select %7, %5, %9 : vector<8x128xi1>, vector<8x128xf32>
    %11 = arith.truncf %10 : vector<8x128xf32> to vector<8x128xbf16>
    %c0_7 = arith.constant 0 : index
    %c0_8 = arith.constant 0 : index
    %12 = vector.load %arg4[%c0_7, %c0_8] : memref<128x128xbf16, #tpu.memory_space<vmem>>, vector<128x128xbf16>
    %cst_9 = arith.constant dense<0.000000e+00> : vector<8x128xf32>
    %13 = tpu.matmul %11, %12, %cst_9 {dimension_numbers = #tpu.dot_dimension_numbers<[1], [0], [0], [1], [0, 0, 1, 1], [], []>} : vector<8x128xbf16>, vector<128x128xbf16>, vector<8x128xf32> -> vector<8x128xf32>
    %c0_10 = arith.constant 0 : index
    %c0_11 = arith.constant 0 : index
    %14 = vector.load %arg5[%c0_10, %c0_11] : memref<1x128xf32, #tpu.memory_space<vmem>>, vector<1x128xf32>
    %15 = vector.broadcast %14 : vector<1x128xf32> to vector<8x128xf32>
    %16 = arith.addf %13, %15 : vector<8x128xf32>
    %cst_12 = arith.constant 0.000000e+00 : f32
    %17 = vector.broadcast %cst_12 : f32 to vector<8x128xf32>
    %18 = arith.cmpf oge, %16, %17 : vector<8x128xf32>
    %cst_13 = arith.constant 1.000000e-01 : f32
    %19 = vector.broadcast %cst_13 : f32 to vector<8x128xf32>
    %20 = arith.mulf %19, %16 : vector<8x128xf32>
    %21 = arith.select %18, %16, %20 : vector<8x128xi1>, vector<8x128xf32>
    %22 = arith.truncf %21 : vector<8x128xf32> to vector<8x128xbf16>
    %c0_14 = arith.constant 0 : index
    %c0_15 = arith.constant 0 : index
    %23 = vector.load %arg6[%c0_14, %c0_15] : memref<128x128xbf16, #tpu.memory_space<vmem>>, vector<128x128xbf16>
    %cst_16 = arith.constant dense<0.000000e+00> : vector<8x128xf32>
    %24 = tpu.matmul %22, %23, %cst_16 {dimension_numbers = #tpu.dot_dimension_numbers<[1], [0], [0], [1], [0, 0, 1, 1], [], []>} : vector<8x128xbf16>, vector<128x128xbf16>, vector<8x128xf32> -> vector<8x128xf32>
    %c0_17 = arith.constant 0 : index
    %c0_18 = arith.constant 0 : index
    %25 = vector.load %arg7[%c0_17, %c0_18] : memref<1x128xf32, #tpu.memory_space<vmem>>, vector<1x128xf32>
    %26 = vector.broadcast %25 : vector<1x128xf32> to vector<8x128xf32>
    %27 = arith.addf %24, %26 : vector<8x128xf32>
    %28 = vector.extract_strided_slice %27 {offsets = [0, 0], sizes = [8, 32], strides = [1, 1]} : vector<8x128xf32> to vector<8x32xf32>
    %29 = vector.extract_strided_slice %27 {offsets = [0, 32], sizes = [8, 32], strides = [1, 1]} : vector<8x128xf32> to vector<8x32xf32>
    %c0_19 = arith.constant 0 : index
    %c0_20 = arith.constant 0 : index
    %30 = vector.load %arg14[%c0_19, %c0_20] : memref<8x32xf32, #tpu.memory_space<vmem>>, vector<8x32xf32>
    %cst_21 = arith.constant 5.000000e-01 : f32
    %31 = vector.broadcast %cst_21 : f32 to vector<8x32xf32>
    %32 = arith.mulf %31, %29 : vector<8x32xf32>
    %33 = math.exp %32 : vector<8x32xf32>
    %34 = arith.mulf %30, %33 : vector<8x32xf32>
    %35 = arith.addf %34, %28 : vector<8x32xf32>
    %36 = arith.truncf %35 : vector<8x32xf32> to vector<8x32xbf16>
    %c0_22 = arith.constant 0 : index
    %c0_23 = arith.constant 0 : index
    %37 = vector.load %arg8[%c0_22, %c0_23] : memref<32x128xbf16, #tpu.memory_space<vmem>>, vector<32x128xbf16>
    %cst_24 = arith.constant dense<0.000000e+00> : vector<8x128xf32>
    %38 = tpu.matmul %36, %37, %cst_24 {dimension_numbers = #tpu.dot_dimension_numbers<[1], [0], [0], [1], [0, 0, 1, 1], [], []>} : vector<8x32xbf16>, vector<32x128xbf16>, vector<8x128xf32> -> vector<8x128xf32>
    %c0_25 = arith.constant 0 : index
    %c0_26 = arith.constant 0 : index
    %39 = vector.load %arg9[%c0_25, %c0_26] : memref<1x128xf32, #tpu.memory_space<vmem>>, vector<1x128xf32>
    %40 = vector.broadcast %39 : vector<1x128xf32> to vector<8x128xf32>
    %41 = arith.addf %38, %40 : vector<8x128xf32>
    %cst_27 = arith.constant 0.000000e+00 : f32
    %42 = vector.broadcast %cst_27 : f32 to vector<8x128xf32>
    %43 = arith.cmpf oge, %41, %42 : vector<8x128xf32>
    %cst_28 = arith.constant 1.000000e-01 : f32
    %44 = vector.broadcast %cst_28 : f32 to vector<8x128xf32>
    %45 = arith.mulf %44, %41 : vector<8x128xf32>
    %46 = arith.select %43, %41, %45 : vector<8x128xi1>, vector<8x128xf32>
    %47 = arith.truncf %46 : vector<8x128xf32> to vector<8x128xbf16>
    %c0_29 = arith.constant 0 : index
    %c0_30 = arith.constant 0 : index
    %48 = vector.load %arg10[%c0_29, %c0_30] : memref<128x128xbf16, #tpu.memory_space<vmem>>, vector<128x128xbf16>
    %cst_31 = arith.constant dense<0.000000e+00> : vector<8x128xf32>
    %49 = tpu.matmul %47, %48, %cst_31 {dimension_numbers = #tpu.dot_dimension_numbers<[1], [0], [0], [1], [0, 0, 1, 1], [], []>} : vector<8x128xbf16>, vector<128x128xbf16>, vector<8x128xf32> -> vector<8x128xf32>
    %c0_32 = arith.constant 0 : index
    %c0_33 = arith.constant 0 : index
    %50 = vector.load %arg11[%c0_32, %c0_33] : memref<1x128xf32, #tpu.memory_space<vmem>>, vector<1x128xf32>
    %51 = vector.broadcast %50 : vector<1x128xf32> to vector<8x128xf32>
    %52 = arith.addf %49, %51 : vector<8x128xf32>
    %cst_34 = arith.constant 0.000000e+00 : f32
    %53 = vector.broadcast %cst_34 : f32 to vector<8x128xf32>
    %54 = arith.cmpf oge, %52, %53 : vector<8x128xf32>
    %cst_35 = arith.constant 1.000000e-01 : f32
    %55 = vector.broadcast %cst_35 : f32 to vector<8x128xf32>
    %56 = arith.mulf %55, %52 : vector<8x128xf32>
    %57 = arith.select %54, %52, %56 : vector<8x128xi1>, vector<8x128xf32>
    %58 = arith.truncf %57 : vector<8x128xf32> to vector<8x128xbf16>
    %c0_36 = arith.constant 0 : index
    %c0_37 = arith.constant 0 : index
    %59 = vector.load %arg12[%c0_36, %c0_37] : memref<128x256xbf16, #tpu.memory_space<vmem>>, vector<128x256xbf16>
    %cst_38 = arith.constant dense<0.000000e+00> : vector<8x256xf32>
    %60 = tpu.matmul %58, %59, %cst_38 {dimension_numbers = #tpu.dot_dimension_numbers<[1], [0], [0], [1], [0, 0, 1, 1], [], []>} : vector<8x128xbf16>, vector<128x256xbf16>, vector<8x256xf32> -> vector<8x256xf32>
    %c0_39 = arith.constant 0 : index
    %c0_40 = arith.constant 0 : index
    %61 = vector.load %arg13[%c0_39, %c0_40] : memref<1x256xf32, #tpu.memory_space<vmem>>, vector<1x256xf32>
    %62 = vector.broadcast %61 : vector<1x256xf32> to vector<8x256xf32>
    %63 = arith.addf %60, %62 : vector<8x256xf32>
    %cst_41 = arith.constant 0.000000e+00 : f32
    %64 = vector.broadcast %cst_41 : f32 to vector<8x256xf32>
    %65 = arith.cmpf oge, %63, %64 : vector<8x256xf32>
    %cst_42 = arith.constant 1.000000e-01 : f32
    %66 = vector.broadcast %cst_42 : f32 to vector<8x256xf32>
    %67 = arith.mulf %66, %63 : vector<8x256xf32>
    %68 = arith.select %65, %63, %67 : vector<8x256xi1>, vector<8x256xf32>
    %cst_43 = arith.constant 0.000000e+00 : f32
    %69 = vector.broadcast %cst_43 : f32 to vector<8x256xf32>
    %70 = arith.subf %69, %68 : vector<8x256xf32>
    %71 = math.exp %70 : vector<8x256xf32>
    %cst_44 = arith.constant 1.000000e+00 : f32
    %72 = vector.broadcast %cst_44 : f32 to vector<8x256xf32>
    %73 = arith.addf %72, %71 : vector<8x256xf32>
    %74 = tpu.reciprocal %73 {approx = true} : vector<8x256xf32> -> vector<8x256xf32>
    %c0_45 = arith.constant 0 : index
    %c0_46 = arith.constant 0 : index
    %75 = vector.load %arg15[%c0_45, %c0_46] : memref<8x128xf32, #tpu.memory_space<vmem>>, vector<8x128xf32>
    tpu.vector_store %arg15[%c0_45, %c0_46], %27 {strides = array<i32>} : memref<8x128xf32, #tpu.memory_space<vmem>>, vector<8x128xf32>,
    %c0_47 = arith.constant 0 : index
    %c0_48 = arith.constant 0 : index
    %76 = vector.load %arg16[%c0_47, %c0_48] : memref<8x256xf32, #tpu.memory_space<vmem>>, vector<8x256xf32>
    tpu.vector_store %arg16[%c0_47, %c0_48], %74 {strides = array<i32>} : memref<8x256xf32, #tpu.memory_space<vmem>>, vector<8x256xf32>,
    return
  }
  func.func @transform_0(%arg0: i32) -> (i32, i32) {
    %c0_i32 = arith.constant 0 : i32
    %c0_i32_0 = arith.constant 0 : i32
    return %arg0, %c0_i32 : i32, i32
  }
  func.func @transform_1(%arg0: i32) -> (i32, i32) {
    %c0_i32 = arith.constant 0 : i32
    %c0_i32_0 = arith.constant 0 : i32
    %c0_i32_1 = arith.constant 0 : i32
    return %c0_i32, %c0_i32_0 : i32, i32
  }
  func.func @transform_2(%arg0: i32) -> (i32, i32) {
    %c0_i32 = arith.constant 0 : i32
    %c0_i32_0 = arith.constant 0 : i32
    %c0_i32_1 = arith.constant 0 : i32
    return %c0_i32, %c0_i32_0 : i32, i32
  }
  func.func @transform_3(%arg0: i32) -> (i32, i32) {
    %c0_i32 = arith.constant 0 : i32
    %c0_i32_0 = arith.constant 0 : i32
    %c0_i32_1 = arith.constant 0 : i32
    return %c0_i32, %c0_i32_0 : i32, i32
  }
  func.func @transform_4(%arg0: i32) -> (i32, i32) {
    %c0_i32 = arith.constant 0 : i32
    %c0_i32_0 = arith.constant 0 : i32
    %c0_i32_1 = arith.constant 0 : i32
    return %c0_i32, %c0_i32_0 : i32, i32
  }
  func.func @transform_5(%arg0: i32) -> (i32, i32) {
    %c0_i32 = arith.constant 0 : i32
    %c0_i32_0 = arith.constant 0 : i32
    %c0_i32_1 = arith.constant 0 : i32
    return %c0_i32, %c0_i32_0 : i32, i32
  }
  func.func @transform_6(%arg0: i32) -> (i32, i32) {
    %c0_i32 = arith.constant 0 : i32
    %c0_i32_0 = arith.constant 0 : i32
    %c0_i32_1 = arith.constant 0 : i32
    return %c0_i32, %c0_i32_0 : i32, i32
  }
  func.func @transform_7(%arg0: i32) -> (i32, i32) {
    %c0_i32 = arith.constant 0 : i32
    %c0_i32_0 = arith.constant 0 : i32
    %c0_i32_1 = arith.constant 0 : i32
    return %c0_i32, %c0_i32_0 : i32, i32
  }
  func.func @transform_8(%arg0: i32) -> (i32, i32) {
    %c0_i32 = arith.constant 0 : i32
    %c0_i32_0 = arith.constant 0 : i32
    %c0_i32_1 = arith.constant 0 : i32
    return %c0_i32, %c0_i32_0 : i32, i32
  }
  func.func @transform_9(%arg0: i32) -> (i32, i32) {
    %c0_i32 = arith.constant 0 : i32
    %c0_i32_0 = arith.constant 0 : i32
    %c0_i32_1 = arith.constant 0 : i32
    return %c0_i32, %c0_i32_0 : i32, i32
  }
  func.func @transform_10(%arg0: i32) -> (i32, i32) {
    %c0_i32 = arith.constant 0 : i32
    %c0_i32_0 = arith.constant 0 : i32
    %c0_i32_1 = arith.constant 0 : i32
    return %c0_i32, %c0_i32_0 : i32, i32
  }
  func.func @transform_11(%arg0: i32) -> (i32, i32) {
    %c0_i32 = arith.constant 0 : i32
    %c0_i32_0 = arith.constant 0 : i32
    %c0_i32_1 = arith.constant 0 : i32
    return %c0_i32, %c0_i32_0 : i32, i32
  }
  func.func @transform_12(%arg0: i32) -> (i32, i32) {
    %c0_i32 = arith.constant 0 : i32
    %c0_i32_0 = arith.constant 0 : i32
    %c0_i32_1 = arith.constant 0 : i32
    return %c0_i32, %c0_i32_0 : i32, i32
  }
  func.func @transform_13(%arg0: i32) -> (i32, i32) {
    %c0_i32 = arith.constant 0 : i32
    %c0_i32_0 = arith.constant 0 : i32
    return %arg0, %c0_i32 : i32, i32
  }
  func.func @transform_14(%arg0: i32) -> (i32, i32) {
    %c0_i32 = arith.constant 0 : i32
    %c0_i32_0 = arith.constant 0 : i32
    return %arg0, %c0_i32 : i32, i32
  }
  func.func @transform_15(%arg0: i32) -> (i32, i32) {
    %c0_i32 = arith.constant 0 : i32
    %c0_i32_0 = arith.constant 0 : i32
    return %arg0, %c0_i32 : i32, i32
  }
}

</mosaic_0001>

<bundles_post_ra>
// kernel: vae_forward.1
= control target key start
LH: loop header
LB: loop body
LE: loop exit
PB: predicated region body
PF: predicated region fallthrough
CT: control target
= control target key end

     0   :  { %21 = vsyncpa [#allocation3], 0  ;;  %s1515_s0 = inlined_call_operand.vmem [shape: bf16[8,256], index: 0, kind: input, shape index: {}]   ;;  %s1516_s1 = inlined_call_operand.hbm [shape: bf16[256,128], index: 1, kind: input, shape index: {}]   ;;  %s1517_s2 = inlined_call_operand.vmem [shape: f32[1,128], index: 2, kind: input, shape index: {}]   ;;  %s1518_s3 = inlined_call_operand.hbm [shape: bf16[128,128], index: 3, kind: input, shape index: {}]   ;;  %s1519_s4 = inlined_call_operand.vmem [shape: f32[1,128], index: 4, kind: input, shape index: {}]   ;;  %s1520_s5 = inlined_call_operand.hbm [shape: bf16[128,128], index: 5, kind: input, shape index: {}]   ;;  %s1521_s6 = inlined_call_operand.vmem [shape: f32[1,128], index: 6, kind: input, shape index: {}]   ;;  %s1522_s7 = inlined_call_operand.vmem [shape: bf16[32,128], index: 7, kind: input, shape index: {}]   ;;  %s1523_s8 = inlined_call_operand.vmem [shape: f32[1,128], index: 8, kind: input, shape index: {}]   ;;  %s1524_s9 = inlined_call_operand.hbm [shape: bf16[128,128], index: 9, kind: input, shape index: {}]   ;;  %s1525_s10 = inlined_call_operand.vmem [shape: f32[1,128], index: 10, kind: input, shape index: {}]   ;;  %s1526_s11 = inlined_call_operand.hbm [shape: bf16[128,256], index: 11, kind: input, shape index: {}]   ;;  %s1527_s12 = inlined_call_operand.vmem [shape: f32[1,256], index: 12, kind: input, shape index: {}]   ;;  %s1528_s13 = inlined_call_operand.vmem [shape: f32[8,32], index: 13, kind: input, shape index: {}]   ;;  %s1529_s14 = inlined_call_operand.vmem [shape: f32[8,128], index: 14, kind: output, shape index: {0}]   ;;  %s1530_s15 = inlined_call_operand.hbm [shape: f32[8,256], index: 15, kind: output, shape index: {1}]  }
   0x1   :  { %22 = vsyncpa [#allocation6], 0 }
   0x2   :  { %23 = vsyncpa [#allocation9], 0 }
   0x3   :  { %24 = vsyncpa [#allocation4], 0  ;;  %s1324_s18 = smov [#allocation5]   ;;  %s1325_s20 = smov [#allocation8]  }
   0x4   :  { %s46_s19 = sshll.u32 %s1324_s18, 4  ;;  %s78_s21 = sshll.u32 %s1325_s20, 4  ;;  %s47_s19 = int_to_ptr.vmem [resolvable:$true] %s46_s19  ;;  %s79_s21 = int_to_ptr.vmem [resolvable:$true] %s78_s21 }
   0x5   :  { %s1204_s22 = scalar_lea.vmem %s47_s19, 1024  ;;  %p1209_p1 = scmp.lt.s32.totalorder %s47_s19, %s47_s19 }
   0x6   :  { %p1205_p0 = scmp.ne.s32.totalorder %s47_s19, %s1204_s22  ;;  %p1210_p2 = scmp.lt.s32.totalorder %s1204_s22, %s1204_s22 }
   0x8   :  { %p1211_p3 = por %p1210_p2, %p1209_p1 }
   0xa   :  { %p1212_p4 = pnand %p1211_p3, %p1205_p0 }
   0xc   :  { %1215 = shalt.err (!%p1212_p4)
}
   0xd   :  { %s1326_s23 = smov 64   ;;  %s1327_s24 = smov 4  }
   0xe   :  { %52 = dma.hbm_to_vmem [thread:$0]  %s1518_s3, 1024, %s47_s19, [#allocation6], %s1326_s23, %s1326_s23, %s1327_s24  }
   0xf   :  { %s1224_s27 = scalar_lea.vmem %s79_s21, 1024  ;;  %p1229_p6 = scmp.lt.s32.totalorder %s79_s21, %s79_s21 }
  0x10   :  { %p1225_p5 = scmp.ne.s32.totalorder %s79_s21, %s1224_s27  ;;  %p1230_p7 = scmp.lt.s32.totalorder %s1224_s27, %s1224_s27 }
  0x12   :  { %p1231_p8 = por %p1230_p7, %p1229_p6 }
  0x14   :  { %p1232_p9 = pnand %p1231_p8, %p1225_p5 }
  0x16   :  { %1235 = shalt.err (!%p1232_p9)
}
  0x17   :  { %84 = dma.hbm_to_vmem [thread:$0]  %s1524_s9, 1024, %s79_s21, [#allocation9], %s1326_s23, %s1326_s23, %s1327_s24  }
  0x18   :  { %s1328_s30 = smov [#allocation2]   ;;  %s1329_s17 = smov [#allocation7]  }
  0x19   :  { %s32_s16 = sshll.u32 %s1328_s30, 4  ;;  %s60_s18 = sshll.u32 %s1329_s17, 4  ;;  %s33_s16 = int_to_ptr.vmem [resolvable:$true] %s32_s16  ;;  %s61_s18 = int_to_ptr.vmem [resolvable:$true] %s60_s18 }
  0x1a   :  { %s1244_s3 = scalar_lea.vmem %s33_s16, 2048  ;;  %p1249_p11 = scmp.lt.s32.totalorder %s33_s16, %s33_s16 }
  0x1b   :  { %p1245_p10 = scmp.ne.s32.totalorder %s33_s16, %s1244_s3  ;;  %p1250_p12 = scmp.lt.s32.totalorder %s1244_s3, %s1244_s3 }
  0x1d   :  { %p1251_p13 = por %p1250_p12, %p1249_p11 }
  0x1f   :  { %p1252_p0 = pnand %p1251_p13, %p1245_p10 }
  0x21   :  { %1255 = shalt.err (!%p1252_p0)
}
  0x22   :  { %38 = dma.hbm_to_vmem [thread:$0]  %s1516_s1, 2048, %s33_s16, [#allocation3], %s1326_s23, %s1326_s23, %s1327_s24  }
  0x23   :  { %s1264_s9 = scalar_lea.vmem %s61_s18, 1024  ;;  %p1269_p2 = scmp.lt.s32.totalorder %s61_s18, %s61_s18 }
  0x24   :  { %p1265_p1 = scmp.ne.s32.totalorder %s61_s18, %s1264_s9  ;;  %p1270_p3 = scmp.lt.s32.totalorder %s1264_s9, %s1264_s9 }
  0x26   :  { %p1271_p4 = por %p1270_p3, %p1269_p2 }
  0x28   :  { %p1272_p5 = pnand %p1271_p4, %p1265_p1 }
  0x2a   :  { %1275 = shalt.err (!%p1272_p5)
}
  0x2b   :  { %66 = dma.hbm_to_vmem [thread:$0]  %s1520_s5, 1024, %s61_s18, [#allocation6], %s1326_s23, %s1326_s23, %s1327_s24  }
  0x2c   :  { %s1330_s25 = smov [#allocation10]  }
  0x2d   :  { %s92_s26 = sshll.u32 %s1330_s25, 4  ;;  %s93_s26 = int_to_ptr.vmem [resolvable:$true] %s92_s26 }
  0x2e   :  { %s1284_s27 = scalar_lea.vmem %s93_s26, 2048  ;;  %p1289_p7 = scmp.lt.s32.totalorder %s93_s26, %s93_s26 }
  0x2f   :  { %p1285_p6 = scmp.ne.s32.totalorder %s93_s26, %s1284_s27  ;;  %p1290_p8 = scmp.lt.s32.totalorder %s1284_s27, %s1284_s27 }
  0x31   :  { %p1291_p9 = por %p1290_p8, %p1289_p7 }
  0x33   :  { %p1292_p10 = pnand %p1291_p9, %p1285_p6 }
  0x35   :  { %1295 = shalt.err (!%p1292_p10)
}
  0x36   :  { %s1331_s1 = smov 128   ;;  %s1332_s28 = smov 8  }
  0x37   :  { %98 = dma.hbm_to_vmem [thread:$0]  %s1526_s11, 2048, %s93_s26, [#allocation9], %s1331_s1, %s1331_s1, %s1332_s28  }
  0x38   :  { %1316 = dma.done.wait [#allocation3], 2048  }
  0x39   :  { %1317 = vsyncadd [#allocation3], 4294965248 }
  0x3a   :  { %1318 = dma.done.wait [#allocation6], 2048  }
  0x3b   :  { %1319 = vsyncadd [#allocation6], 4294965248 }
  0x3c   :  { %1320 = dma.done.wait [#allocation9], 3072  }
  0x3d   :  { %1321 = vsyncadd [#allocation9], 4294964224  ;;  %v1333_v0 = vmov 0.0   ;;  %v1118_v1 = vld [vmem:[#allocation2 + $0x78] sm:$0xff]   ;;  %v1120_v3 = vld [vmem:[#allocation2 + $0x70] sm:$0xff]   ;;  %vm1334_vm0 = vmmov 0  }
  0x3e   :  { %1036 = vmatprep.subr.bf16.mxu1 %v1333_v0  ;;  %v1119_v2 = vld [vmem:[#allocation2 + $0x38] sm:$0xff]   ;;  %984 = vmatprep.subr.bf16.mxu0 %v1118_v1  ;;  %v1121_v4 = vld [vmem:[#allocation2 + $0x30] sm:$0xff]   ;;  %v1122_v5 = vld [vmem:[#allocation2 + $0x68] sm:$0xff]   ;;  %vm566_vm3 = vcmask 261120  }
  0x3f   :  { %985 = vmatpush3.bf16.msra.mxu0 %v1119_v2  ;;  %v1123_v6 = vld [vmem:[#allocation2 + $0x28] sm:$0xff]   ;;  %v1124_v7 = vld [vmem:[#allocation2 + $0x60] sm:$0xff]   ;;  %v1126_v9 = vld [vmem:[#allocation2 + $0x58] sm:$0xff]   ;;  %1052 = vmatprep.mubr.msk.bf16.mxu1 %vm1334_vm0, %v1333_v0 }
  0x40   :  { %986 = vmatprep.subr.bf16.mxu0 %v1120_v3  ;;  %v1125_v8 = vld [vmem:[#allocation2 + $0x20] sm:$0xff]   ;;  %v1127_v10 = vld [vmem:[#allocation2 + $0x18] sm:$0xff]   ;;  %v1128_v11 = vld [vmem:[#allocation2 + $0x50] sm:$0xff]  }
  0x41   :  { %v119_v12 = vld [vmem:[%s1515_s0] sm:$0xff]  ;;  %v1136_v14 = vld [vmem:[#allocation5 + $0x38] sm:$0xff]   ;;  %v1129_v15 = vld [vmem:[#allocation2 + $0x10] sm:$0xff]  }
  0x42   :  { %v920_v13 = vcombine.high %v119_v12, %v119_v12  ;;  %v1130_v16 = vld [vmem:[#allocation2 + $0x48] sm:$0xff]   ;;  %1037 = vmatpush3.bf16.msra.mxu1 %v1136_v14  ;;  %v1137_v17 = vld [vmem:[#allocation5 + $0x30] sm:$0xff]   ;;  %v1132_v19 = vld [vmem:[#allocation2 + $0x40] sm:$0xff]   ;;  %v919_v23 = vcombine.low %v119_v12, %v119_v12 }
  0x43   :  { %987 = vmatpush3.bf16.msra.mxu0 %v1121_v4  ;;  %v1131_v18 = vld [vmem:[#allocation2 + $0x8] sm:$0xff]   ;;  %1038 = vmatprep.subr.bf16.mxu1 %v1333_v0  ;;  %v1133_v21 = vld [vmem:[#allocation2] sm:$0xff]   ;;  %v1140_v24 = vld [vmem:[#allocation5 + $0x18] sm:$0xff]  }
  0x44   :  { %988 = vmatprep.subr.bf16.mxu0 %v1122_v5  ;;  %294 = vmatprep.mubr.bf16.mxu0 %v920_v13  ;;  %v1138_v20 = vld [vmem:[#allocation5 + $0x28] sm:$0xff]   ;;  %v1139_v22 = vld [vmem:[#allocation5 + $0x20] sm:$0xff]   ;;  %v1141_v25 = vld [vmem:[#allocation5 + $0x10] sm:$0xff]  }
  0x45   :  { %v1142_v26 = vld [vmem:[#allocation5 + $0x8] sm:$0xff]   ;;  %v1143_v27 = vld [vmem:[#allocation5] sm:$0xff]   ;;  %v1144_v28 = vld [vmem:[#allocation7 + $0x38] sm:$0xff]  }
  0x46   :  { %1039 = vmatpush3.bf16.msra.mxu1 %v1137_v17  ;;  %v1145_v29 = vld [vmem:[#allocation7 + $0x30] sm:$0xff]   ;;  %v1146_v30 = vld [vmem:[#allocation7 + $0x28] sm:$0xff]   ;;  %v1147_v31 = vld [vmem:[#allocation7 + $0x20] sm:$0xff]  }
  0x47   :  { %989 = vmatpush3.bf16.msra.mxu0 %v1123_v6  ;;  %1040 = vmatprep.subr.bf16.mxu1 %v1333_v0  ;;  %v1148_v32 = vld [vmem:[#allocation7 + $0x18] sm:$0xff]   ;;  %v1149_v33 = vld [vmem:[#allocation7 + $0x10] sm:$0xff]   ;;  %v918_v35 = vld [vmem:[%s1517_s2] ss:$0 sm:$0xff] }
  0x48   :  { %990 = vmatprep.subr.bf16.mxu0 %v1124_v7  ;;  %v1150_v44 = vld [vmem:[#allocation7 + $0x8] sm:$0xff]   ;;  %v1151_v45 = vld [vmem:[#allocation7] sm:$0xff]   ;;  %v1154_v7 = vld [vmem:[#allocation8 + $0x38] sm:$0xff]  }
  0x49   :  { %v937_v46 = vld [vmem:[%s1519_s4] ss:$0 sm:$0xff]  ;;  %v1152_v55 = vld [vmem:[%s1522_s7 + $0x8] sm:$0xff]   ;;  %v1158_v12 = vld [vmem:[#allocation8 + $0x18] sm:$0xff]  }
  0x4a   :  { %1041 = vmatpush3.bf16.msra.mxu1 %v1138_v20  ;;  %v946_v56 = vld [vmem:[%s1521_s6] ss:$0 sm:$0xff]  ;;  %s1335_s6 = smov 96   ;;  %v1159_v13 = vld [vmem:[#allocation8 + $0x10] sm:$0xff]   ;;  %v1160_v14 = vld [vmem:[#allocation8 + $0x8] sm:$0xff]  }
  0x4b   :  { %991 = vmatpush3.bf16.msra.mxu0 %v1125_v8  ;;  %1042 = vmatprep.subr.bf16.mxu1 %v1333_v0  ;;  %v1153_v1 = vld [vmem:[%s1522_s7] sm:$0xff]   ;;  %v1164_v17 = vld [vmem:[#allocation10 + $0x74] ss:$8 sps:$4 sm:$0xff]  }
  0x4c   :  { %992 = vmatprep.subr.bf16.mxu0 %v1126_v9  ;;  %v532_v3 = vld [vmem:[%s1528_s13] sm:$0xff]  ;;  %v1155_v9 = vld [vmem:[#allocation8 + $0x30] sm:$0xff]  }
  0x4d   :  { %v1170_v20 = vld [vmem:[#allocation10 + $0x54] ss:$8 sps:$4 sm:$0xff]  }
  0x4e   :  { %1043 = vmatpush3.bf16.msra.mxu1 %v1139_v22  ;;  %v1173_v22 = vld [vmem:[#allocation10 + $0x44] ss:$8 sps:$4 sm:$0xff]  }
  0x4f   :  { %993 = vmatpush3.bf16.msra.mxu0 %v1127_v10  ;;  %1044 = vmatprep.subr.bf16.mxu1 %v1333_v0  ;;  %v1156_v10 = vld [vmem:[#allocation8 + $0x28] sm:$0xff]  }
  0x50   :  { %994 = vmatprep.subr.bf16.mxu0 %v1128_v11  ;;  %v1157_v11 = vld [vmem:[#allocation8 + $0x20] sm:$0xff]  }
  0x52   :  { %1045 = vmatpush3.bf16.msra.mxu1 %v1140_v24  ;;  %v1176_v24 = vld [vmem:[#allocation10 + $0x34] ss:$8 sps:$4 sm:$0xff]  }
  0x53   :  { %995 = vmatpush3.bf16.msra.mxu0 %v1129_v15  ;;  %1046 = vmatprep.subr.bf16.mxu1 %v1333_v0  ;;  %v1161_v15 = vld [vmem:[#allocation8] sm:$0xff]  }
  0x54   :  { %996 = vmatprep.subr.bf16.mxu0 %v1130_v16  ;;  %v1162_v16 = vld [vmem:[#allocation10 + $0x70] ss:$8 sps:$4 sm:$0xff]  }
  0x56   :  { %1047 = vmatpush3.bf16.msra.mxu1 %v1141_v25  ;;  %v1179_v25 = vld [vmem:[#allocation10 + $0x24] ss:$8 sps:$4 sm:$0xff]  }
  0x57   :  { %997 = vmatpush3.bf16.msra.mxu0 %v1131_v18  ;;  %1048 = vmatprep.subr.bf16.mxu1 %v1333_v0  ;;  %v1167_v18 = vld [vmem:[#allocation10 + $0x64] ss:$8 sps:$4 sm:$0xff]  }
  0x58   :  { %998 = vmatprep.subr.bf16.mxu0 %v1132_v19  ;;  %v1165_v19 = vld [vmem:[#allocation10 + $0x60] ss:$8 sps:$4 sm:$0xff]  }
  0x5a   :  { %1049 = vmatpush3.bf16.msra.mxu1 %v1142_v26  ;;  %v1177_v26 = vld [vmem:[#allocation10 + $0x20] ss:$8 sps:$4 sm:$0xff]  }
  0x5b   :  { %999 = vmatpush3.bf16.msra.mxu0 %v1133_v21  ;;  %1050 = vmatprep.subr.bf16.mxu1 %v1333_v0  ;;  %v1168_v21 = vld [vmem:[#allocation10 + $0x50] ss:$8 sps:$4 sm:$0xff]  }
  0x5c   :  { %1056 = vmatprep.subr.bf16.mxu0 %v1333_v0 }
  0x5e   :  { %295 = vmatmul.mubr.bf16.vlgmr.msra.gmra.mxu0 %v919_v23  ;;  %1051 = vmatpush3.bf16.msra.mxu1 %v1143_v27  ;;  %v1171_v23 = vld [vmem:[#allocation10 + $0x40] ss:$8 sps:$4 sm:$0xff]  }
  0x5f   :  { %1072 = vmatprep.mubr.msk.bf16.mxu0 %vm1334_vm0, %v1333_v0  ;;  %1076 = vmatprep.subr.bf16.mxu1 %v1333_v0  ;;  %v955_v27 = vld [vmem:[%s1523_s8] ss:$0 sm:$0xff] }
  0x60   :  { %1057 = vmatpush3.bf16.msra.mxu0 %v1144_v28 }
  0x61   :  { %1058 = vmatprep.subr.bf16.mxu0 %v1333_v0 }
  0x64   :  { %1059 = vmatpush3.bf16.msra.mxu0 %v1145_v29 }
  0x65   :  { %1060 = vmatprep.subr.bf16.mxu0 %v1333_v0 }
  0x68   :  { %1061 = vmatpush3.bf16.msra.mxu0 %v1146_v30 }
  0x69   :  { %1062 = vmatprep.subr.bf16.mxu0 %v1333_v0 }
  0x6c   :  { %1063 = vmatpush3.bf16.msra.mxu0 %v1147_v31 }
  0x6d   :  { %1064 = vmatprep.subr.bf16.mxu0 %v1333_v0 }
  0x70   :  { %1065 = vmatpush3.bf16.msra.mxu0 %v1148_v32 }
  0x71   :  { %1066 = vmatprep.subr.bf16.mxu0 %v1333_v0 }
  0x74   :  { %1067 = vmatpush3.bf16.msra.mxu0 %v1149_v33 }
  0x75   :  { %1068 = vmatprep.subr.bf16.mxu0 %v1333_v0 }
  0x78   :  { %1069 = vmatpush3.bf16.msra.mxu0 %v1150_v44 }
  0x79   :  { %1070 = vmatprep.subr.bf16.mxu0 %v1333_v0 }
  0x7c   :  { %1071 = vmatpush3.bf16.msra.mxu0 %v1151_v45 }
  0x7d   :  { %837 = vmatprep.subr.bf16.mxu0 %v1164_v17 }
 0x11e   :  { %v1000_v34 = vpop.f32.mrf.mxu0 }
 0x120   :  { %v1001_v36 = vpop.f32.mrf.mxu0 }
 0x121   :  { %v1002_v37 = vadd.f32 %v1001_v36, %v1000_v34  ;;  %v1182_v36 = vld [vmem:[#allocation10 + $0x14] ss:$8 sps:$4 sm:$0xff]  }
 0x122   :  { %v1003_v38 = vpop.f32.mrf.mxu0 }
 0x123   :  { %v297_v39 = vadd.f32 %v1002_v37, %v918_v35  ;;  %v1180_v37 = vld [vmem:[#allocation10 + $0x10] ss:$8 sps:$4 sm:$0xff]   ;;  %v1185_v38 = vld [vmem:[#allocation10 + $0x4] ss:$8 sps:$4 sm:$0xff]  }
 0x124   :  { %v1004_v40 = vpop.f32.mrf.mxu0 }
 0x125   :  { %v303_v41 = vmul.f32 0.1, %v297_v39  ;;  %vm302_vm1 = vcmp.ge.f32.partialorder %v297_v39, 0.0  ;;  %v1336_v40 = vmov 0  }
 0x127   :  { %v304_v42 = vsel %vm302_vm1, %v297_v39, %v303_v41  ;;  %v1183_v39 = vld [vmem:[#allocation10] ss:$8 sps:$4 sm:$0xff]  }
 0x128   :  { %v305_v43 = vpack.c.bf16 %v304_v42, %v304_v42  ;;  %v959_v41 = vld [vmem:[%s1525_s10] ss:$0 sm:$0xff]  ;;  %s1337_s10 = smov [#allocation11]  }
 0x12a   :  { %1053 = vmatmul.mubr.bf16.vlgmr.msra.gmra.mxu1 %v305_v43 }
 0x12b   :  { %1080 = vmatprep.mubr.msk.bf16.mxu1 %vm1334_vm0, %v1333_v0  ;;  %1077 = vmatpush3.bf16.msra.mxu1 %v1152_v55 }
 0x12c   :  { %1078 = vmatprep.subr.bf16.mxu1 %v1333_v0 }
 0x12f   :  { %1079 = vmatpush3.bf16.msra.mxu1 %v1153_v1 }
 0x130   :  { %1084 = vmatprep.subr.bf16.mxu1 %v1333_v0 }
 0x1ea   :  { %v411_v47 = vpop.f32.mrf.mxu1 }
 0x1eb   :  { %v412_v48 = vadd.f32 %v937_v46, %v411_v47 }
 0x1ec   :  { %v1054_v49 = vpop.f32.mrf.mxu1 }
 0x1ed   :  { %vm417_vm2 = vcmp.ge.f32.partialorder %v412_v48, 0.0  ;;  %v418_v50 = vmul.f32 0.1, %v412_v48 }
 0x1ee   :  { %v414_v51 = vpop.f32.mrf.mxu1 }
 0x1ef   :  { %v419_v52 = vsel %vm417_vm2, %v412_v48, %v418_v50  ;;  %v747_v50 = vlaneseq }
 0x1f0   :  { %v420_v53 = vpack.c.bf16 %v419_v52, %v419_v52  ;;  %v1055_v54 = vpop.f32.mrf.mxu1 }
 0x1f1   :  { %v748_v51 = vshrl.u32 %v747_v50, 7 }
 0x1f2   :  { %1073 = vmatmul.mubr.bf16.vlgmr.msra.gmra.mxu0 %v420_v53  ;;  %v745_v53 = vld [vmem:[%s1527_s12] sm:$0x3]  ;;  %s905_s12 = sshll.u32 %s1337_s10, 4  ;;  %s906_s12 = int_to_ptr.vmem [resolvable:$true] %s905_s12 }
 0x1f3   :  { %838 = vmatpush1.bf16.msra.mxu0 %v1162_v16  ;;  %869 = vmatprep.mubr.bf16.mxu0 %v1336_v40  ;;  %v749_v52 = vsub.s32 0, %v748_v51  ;;  %v753_v54 = vsub.s32 1, %v748_v51  ;;  %s1296_s27 = scalar_lea.vmem %s906_s12, 256  ;;  %p1301_p12 = scmp.lt.s32.totalorder %s906_s12, %s906_s12 }
 0x1f4   :  { %839 = vmatprep.subr.bf16.mxu0 %v1167_v18  ;;  %p1297_p11 = scmp.ne.s32.totalorder %s906_s12, %s1296_s27  ;;  %p1302_p13 = scmp.lt.s32.totalorder %s1296_s27, %s1296_s27 }
 0x1f5   :  { %v750_v55 = vrot.slane %v745_v53, %v749_v52 }
 0x1f6   :  { %p1303_p0 = por %p1302_p13, %p1301_p12 }
 0x1f7   :  { %840 = vmatpush1.bf16.msra.mxu0 %v1165_v19 }
 0x1f8   :  { %841 = vmatprep.subr.bf16.mxu0 %v1170_v20  ;;  %p1304_p1 = pnand %p1303_p0, %p1297_p11 }
 0x1fb   :  { %842 = vmatpush1.bf16.msra.mxu0 %v1168_v21 }
 0x1fc   :  { %843 = vmatprep.subr.bf16.mxu0 %v1173_v22 }
 0x1ff   :  { %844 = vmatpush1.bf16.msra.mxu0 %v1171_v23 }
 0x200   :  { %845 = vmatprep.subr.bf16.mxu0 %v1176_v24 }
 0x2b2   :  { %v526_v57 = vpop.f32.mrf.mxu0 }
 0x2b3   :  { %v527_v58 = vadd.f32 %v946_v56, %v526_v57  ;;  %v754_v56 = vrot.slane %v745_v53, %v753_v54 }
 0x2b4   :  { %v1074_v59 = vpop.f32.mrf.mxu0 }
 0x2b5   :  { %v533_v60 = vmul.f32 0.5, %v527_v58  ;;  %894 = vst [vmem:[%s1529_s14] sm:$0xff] %v527_v58 }
 0x2b6   :  { %v529_v61 = vpop.f32.mrf.mxu0 }
 0x2b7   :  { %v534_v62 = vmul.f32 1.442695, %v533_v60 }
 0x2b8   :  { %v1075_v63 = vpop.f32.mrf.mxu0 }
 0x2b9   :  { %1186 = vpow2.f32 %v534_v62 }
 0x2c6   :  { %v1187_v2 = vpop.eup %1186 }
 0x2c7   :  { %537 = vrot.lane.b32.xlu0 %v1187_v2, %s1335_s6 }
 0x339   :  { %v538_v4 = vpop.permute.xlu0 %537 }
 0x33a   :  { %v540_v5 = vmul.f32 %v538_v4, %v532_v3 }
 0x33c   :  { %v541_v6 = vadd.f32 %v540_v5, %v527_v58 }
 0x33e   :  { %v542_v8 = vpack.c.bf16 %v541_v6, %v541_v6 }
 0x340   :  { %1081 = vmatmul.mubr.msk.bf16.vlgmr.msra.gmra.mxu1 %vm566_vm3, %v542_v8 }
 0x341   :  { %1085 = vmatpush3.bf16.msra.mxu1 %v1154_v7  ;;  %1100 = vmatprep.mubr.msk.bf16.mxu1 %vm1334_vm0, %v1333_v0 }
 0x342   :  { %1086 = vmatprep.subr.bf16.mxu1 %v1333_v0 }
 0x345   :  { %1087 = vmatpush3.bf16.msra.mxu1 %v1155_v9 }
 0x346   :  { %1088 = vmatprep.subr.bf16.mxu1 %v1333_v0 }
 0x349   :  { %1089 = vmatpush3.bf16.msra.mxu1 %v1156_v10 }
 0x34a   :  { %1090 = vmatprep.subr.bf16.mxu1 %v1333_v0 }
 0x34d   :  { %1091 = vmatpush3.bf16.msra.mxu1 %v1157_v11 }
 0x34e   :  { %1092 = vmatprep.subr.bf16.mxu1 %v1333_v0 }
 0x351   :  { %1093 = vmatpush3.bf16.msra.mxu1 %v1158_v12 }
 0x352   :  { %1094 = vmatprep.subr.bf16.mxu1 %v1333_v0 }
 0x355   :  { %1095 = vmatpush3.bf16.msra.mxu1 %v1159_v13 }
 0x356   :  { %1096 = vmatprep.subr.bf16.mxu1 %v1333_v0 }
 0x359   :  { %1097 = vmatpush3.bf16.msra.mxu1 %v1160_v14 }
 0x35a   :  { %1098 = vmatprep.subr.bf16.mxu1 %v1333_v0  ;;  %v1174_v0 = vld [vmem:[#allocation10 + $0x30] ss:$8 sps:$4 sm:$0xff]  }
 0x35b   :  { %846 = vmatpush1.bf16.msra.mxu0 %v1174_v0 }
 0x35c   :  { %847 = vmatprep.subr.bf16.mxu0 %v1179_v25 }
 0x35d   :  { %1099 = vmatpush3.bf16.msra.mxu1 %v1161_v15 }
 0x35f   :  { %848 = vmatpush1.bf16.msra.mxu0 %v1177_v26 }
 0x360   :  { %849 = vmatprep.subr.bf16.mxu0 %v1182_v36 }
 0x363   :  { %850 = vmatpush1.bf16.msra.mxu0 %v1180_v37 }
 0x364   :  { %851 = vmatprep.subr.bf16.mxu0 %v1185_v38 }
 0x367   :  { %852 = vmatpush1.bf16.msra.mxu0 %v1183_v39 }
 0x400   :  { %v604_v28 = vpop.f32.mrf.mxu1 }
 0x401   :  { %v605_v29 = vadd.f32 %v955_v27, %v604_v28 }
 0x402   :  { %v1082_v30 = vpop.f32.mrf.mxu1 }
 0x403   :  { %vm610_vm4 = vcmp.ge.f32.partialorder %v605_v29, 0.0  ;;  %v611_v31 = vmul.f32 0.1, %v605_v29 }
 0x404   :  { %v607_v32 = vpop.f32.mrf.mxu1 }
 0x405   :  { %v612_v33 = vsel %vm610_vm4, %v605_v29, %v611_v31 }
 0x406   :  { %v613_v34 = vpack.c.bf16 %v612_v33, %v612_v33  ;;  %v1083_v35 = vpop.f32.mrf.mxu1 }
 0x408   :  { %1101 = vmatmul.mubr.bf16.vlgmr.msra.gmra.mxu1 %v613_v34 }
 0x4c8   :  { %v719_v42 = vpop.f32.mrf.mxu1 }
 0x4c9   :  { %v720_v43 = vadd.f32 %v959_v41, %v719_v42 }
 0x4ca   :  { %v1102_v44 = vpop.f32.mrf.mxu1 }
 0x4cb   :  { %vm725_vm5 = vcmp.ge.f32.partialorder %v720_v43, 0.0  ;;  %v726_v45 = vmul.f32 0.1, %v720_v43 }
 0x4cc   :  { %v722_v46 = vpop.f32.mrf.mxu1 }
 0x4cd   :  { %v727_v47 = vsel %vm725_vm5, %v720_v43, %v726_v45 }
 0x4ce   :  { %v728_v48 = vpack.c.bf16 %v727_v47, %v727_v47  ;;  %v1103_v49 = vpop.f32.mrf.mxu1 }
 0x4d0   :  { %870 = vmatmul.mubr.bf16.vlgmr.msra.gmra.mxu0 %v728_v48 }
 0x590   :  { %v871_v57 = vpop.f32.mrf.mxu0 }
 0x591   :  { %v872_v58 = vadd.f32 %v871_v57, %v750_v55 }
 0x592   :  { %v873_v59 = vpop.f32.mrf.mxu0 }
 0x593   :  { %vm878_vm6 = vcmp.ge.f32.partialorder %v872_v58, 0.0  ;;  %v880_v60 = vmul.f32 0.1, %v872_v58  ;;  %v874_v61 = vadd.f32 %v873_v59, %v754_v56 }
 0x594   :  { %v875_v62 = vpop.f32.mrf.mxu0 }
 0x595   :  { %v882_v63 = vsel %vm878_vm6, %v872_v58, %v880_v60  ;;  %vm879_vm7 = vcmp.ge.f32.partialorder %v874_v61, 0.0  ;;  %v881_v1 = vmul.f32 0.1, %v874_v61 }
 0x596   :  { %v884_v2 = vsub.f32 0.0, %v882_v63  ;;  %v876_v3 = vpop.f32.mrf.mxu0 }
 0x597   :  { %v883_v4 = vsel %vm879_vm7, %v874_v61, %v881_v1 }
 0x598   :  { %v886_v5 = vmul.f32 1.442695, %v884_v2  ;;  %v885_v6 = vsub.f32 0.0, %v883_v4 }
 0x59a   :  { %1188 = vpow2.f32 %v886_v5  ;;  %v888_v7 = vmul.f32 1.442695, %v885_v6 }
 0x59c   :  { %1190 = vpow2.f32 %v888_v7 }
 0x5a7   :  { %v1189_v8 = vpop.eup %1188 }
 0x5a8   :  { %v890_v9 = vadd.f32 1.0, %v1189_v8 }
 0x5a9   :  { %v1191_v10 = vpop.eup %1190 }
 0x5aa   :  { %1192 = vrcp.f32 %v890_v9  ;;  %v891_v11 = vadd.f32 1.0, %v1191_v10 }
 0x5ac   :  { %1194 = vrcp.f32 %v891_v11 }
 0x5b7   :  { %v1193_v12 = vpop.eup %1192 }
 0x5b8   :  { %895 = vst [vmem:[#allocation11] sm:$0xff] %v1193_v12 }
 0x5b9   :  { %v1195_v13 = vpop.eup %1194 }
 0x5ba   :  { %896 = vst [vmem:[#allocation11 + $0x8] sm:$0xff] %v1195_v13 }
 0x5bb   :  { %1307 = shalt.err (!%p1304_p1)
}
 0x5bc   :  { %908 = dma.vmem_to_hbm [thread:$0]  %s906_s12, 256, %s1530_s15, [#allocation4]  }
 0x5bd   :  { %1322 = dma.done.wait [#allocation4], 256  }
 0x5be   :  { %1323 = vsyncadd [#allocation4], 4294967040 }
 0x5bf   :  { %914 = vsyncpa [#allocation3], 1 }
 0x5c0   :  { %915 = vsyncpa [#allocation6], 1 }
 0x5c1   :  { %916 = vsyncpa [#allocation9], 1 }
 0x5c2   :  { %917 = vsyncpa [#allocation4], 1 }

</bundles_post_ra>
